<compile_context>
chip_gen: v7x
topology: tpu7x:2x2x1
jax: 0.10.0
libtpu: 0.0.40
codegen_flags: <defaults>
</compile_context>

<pallas_src>
import math

import jax
import jax.numpy as jnp
from jax import lax
from jax.experimental import pallas as pl
from jax.experimental.pallas import tpu as pltpu

# ---------------- configuration (mirrors the PyTorch module defaults) ------------
D_IN = 32
NUM_HEADS = 4
NUM_KV_GROUPS = 2
GROUP_SIZE = NUM_HEADS // NUM_KV_GROUPS
HEAD_DIM = D_IN // NUM_HEADS            # module computes head_dim from d_in
D_OUT = NUM_HEADS * HEAD_DIM            # module's self.d_out
KV_DIM = NUM_KV_GROUPS * HEAD_DIM
QKV_DIM = D_OUT + 2 * KV_DIM            # fused projection width
MAX_SEQ_LEN = 16
BATCH = 2
SEQ = 8
DTYPE = jnp.float32
ROPE_THETA = 10000.0


# --------------------------- fused forward kernel --------------------------------
def _fused_gqa_kernel(x_ref, wqkv_ref, wout_ref, cosq_ref, sinq_ref,
                      cosk_ref, sink_ref, rq_ref, rk_ref, o_ref):
    # x_ref block: (1, T, D_IN); all other operands are full (grid-invariant).
    x = x_ref[0].astype(jnp.float32)                                   # (T, D_IN)

    # Fused QKV projection: one MXU pass instead of three skinny ones.
    qkv = jnp.dot(x, wqkv_ref[...], preferred_element_type=jnp.float32)  # (T, QKV_DIM)
    q = qkv[:, :D_OUT]                                                 # (T, H*hd)
    k = qkv[:, D_OUT:D_OUT + KV_DIM]                                   # (T, G*hd)
    v = qkv[:, D_OUT + KV_DIM:]                                        # (T, G*hd)

    # RoPE on the packed head layout. rotate_half is a signed block-diagonal
    # permutation applied on the MXU:
    #   (t @ R)[:, h*hd + j] == rotate_half(t_head_h)[:, j]
    # so no per-head lane slicing / concatenate is needed, and K is RoPE'd
    # exactly once per kv-group per batch element.
    q = (q * cosq_ref[...]
         + jnp.dot(q, rq_ref[...], preferred_element_type=jnp.float32) * sinq_ref[...])
    k = (k * cosk_ref[...]
         + jnp.dot(k, rk_ref[...], preferred_element_type=jnp.float32) * sink_ref[...])

    T = q.shape[0]
    row = lax.broadcasted_iota(jnp.int32, (T, T), 0)
    col = lax.broadcasted_iota(jnp.int32, (T, T), 1)
    causal = col <= row
    scale = 1.0 / math.sqrt(HEAD_DIM)

    # All query heads of this batch element; GQA "repeat_interleave" is just the
    # kv-group index g = h // GROUP_SIZE (K/V read from VMEM, no duplication).
    ctx_heads = []
    for h in range(NUM_HEADS):
        g = h // GROUP_SIZE
        qh = q[:, h * HEAD_DIM:(h + 1) * HEAD_DIM]                     # (T, hd)
        kh = k[:, g * HEAD_DIM:(g + 1) * HEAD_DIM]                     # (T, hd)
        vh = v[:, g * HEAD_DIM:(g + 1) * HEAD_DIM]                     # (T, hd)

        s = jnp.dot(qh, kh.T, preferred_element_type=jnp.float32) * scale
        s = jnp.where(causal, s, -jnp.inf)
        s = s - jnp.max(s, axis=-1, keepdims=True)
        p = jnp.exp(s)
        p = p * pl.reciprocal(jnp.sum(p, axis=-1, keepdims=True), approx=True)
        ctx_heads.append(jnp.dot(p, vh, preferred_element_type=jnp.float32))

    # ctx already in (T, H*hd) layout -> lane-dense output, no wrapper transpose.
    ctx = jnp.concatenate(ctx_heads, axis=-1)                          # (T, D_OUT)
    out = jnp.dot(ctx, wout_ref[...], preferred_element_type=jnp.float32)  # (T, D_IN)
    o_ref[0] = out.astype(o_ref.dtype)


# ----------------------- one-time host-side parameter prep -----------------------
def prepare_fused_params(params, cos, sin, seq_len):
    """Pre-transpose + fuse weights and pack RoPE tables (amortized over calls)."""
    # nn.Linear stores weight as (out_features, in_features): y = x @ W.T
    w_qkv = jnp.concatenate(
        [params["w_query"].T, params["w_key"].T, params["w_value"].T], axis=1)  # (D_IN, QKV_DIM)
    w_out = params["out_proj"].T                                                # (D_OUT, D_IN)

    # t @ R == rotate_half(t) == concat(-t[:, half:], t[:, :half])
    half = HEAD_DIM // 2
    eye = jnp.eye(half, dtype=DTYPE)
    zero = jnp.zeros((half, half), dtype=DTYPE)
    r = jnp.concatenate(
        [jnp.concatenate([zero, eye], axis=1),
         jnp.concatenate([-eye, zero], axis=1)], axis=0)                        # (hd, hd)
    rq = jnp.kron(jnp.eye(NUM_HEADS, dtype=DTYPE), r)                           # (D_OUT, D_OUT)
    rk = jnp.kron(jnp.eye(NUM_KV_GROUPS, dtype=DTYPE), r)                       # (KV_DIM, KV_DIM)

    cos_t, sin_t = cos[:seq_len], sin[:seq_len]                                 # ptr = 0
    return dict(
        w_qkv=w_qkv, w_out=w_out, rq=rq, rk=rk,
        cos_q=jnp.tile(cos_t, (1, NUM_HEADS)), sin_q=jnp.tile(sin_t, (1, NUM_HEADS)),
        cos_k=jnp.tile(cos_t, (1, NUM_KV_GROUPS)), sin_k=jnp.tile(sin_t, (1, NUM_KV_GROUPS)),
    )


# ------------------------------ forward wrapper ----------------------------------
def gqa_forward(x, fused):
    B, T, _ = x.shape
    flops = B * 2 * T * (D_IN * QKV_DIM + D_OUT * D_OUT + KV_DIM * KV_DIM
                         + NUM_HEADS * 2 * T * HEAD_DIM + D_OUT * D_IN)
    bytes_accessed = 4 * (x.size + B * T * D_IN
                          + sum(int(v.size) for v in fused.values()))
    return pl.pallas_call(
        _fused_gqa_kernel,
        grid=(B,),
        in_specs=[
            pl.BlockSpec((1, T, D_IN), lambda b: (b, 0, 0)),     # x
            pl.BlockSpec((D_IN, QKV_DIM), lambda b: (0, 0)),     # fused W_qkv^T
            pl.BlockSpec((D_OUT, D_IN), lambda b: (0, 0)),       # W_out^T
            pl.BlockSpec((T, D_OUT), lambda b: (0, 0)),          # cos (packed, Q)
            pl.BlockSpec((T, D_OUT), lambda b: (0, 0)),          # sin (packed, Q)
            pl.BlockSpec((T, KV_DIM), lambda b: (0, 0)),         # cos (packed, K)
            pl.BlockSpec((T, KV_DIM), lambda b: (0, 0)),         # sin (packed, K)
            pl.BlockSpec((D_OUT, D_OUT), lambda b: (0, 0)),      # rotate_half perm (Q)
            pl.BlockSpec((KV_DIM, KV_DIM), lambda b: (0, 0)),    # rotate_half perm (K)
        ],
        out_specs=pl.BlockSpec((1, T, D_IN), lambda b: (b, 0, 0)),
        out_shape=jax.ShapeDtypeStruct((B, T, D_IN), x.dtype),
        compiler_params=pltpu.CompilerParams(dimension_semantics=("parallel",)),
        cost_estimate=pl.CostEstimate(
            flops=flops,
            transcendentals=B * NUM_HEADS * T * T,
            bytes_accessed=bytes_accessed),
    )(x, fused["w_qkv"], fused["w_out"], fused["cos_q"], fused["sin_q"],
      fused["cos_k"], fused["sin_k"], fused["rq"], fused["rk"])


# --------------------------- pure-JAX reference check -----------------------------
def ref_forward(x, cos, sin, params):
    b, T, _ = x.shape
    q = x @ params["w_query"].T
    k = x @ params["w_key"].T
    v = x @ params["w_value"].T
    q = q.reshape(b, T, NUM_HEADS, HEAD_DIM).transpose(0, 2, 1, 3)
    k = k.reshape(b, T, NUM_KV_GROUPS, HEAD_DIM).transpose(0, 2, 1, 3)
    v = v.reshape(b, T, NUM_KV_GROUPS, HEAD_DIM).transpose(0, 2, 1, 3)

    cs, sn = cos[:T], sin[:T]

    def rope(t):
        half = HEAD_DIM // 2
        x1, x2 = t[..., :half], t[..., half:]
        rot = jnp.concatenate([-x2, x1], axis=-1)
        return t * cs + rot * sn

    q = rope(q)
    k = rope(k)
    k = jnp.repeat(k, GROUP_SIZE, axis=1)
    v = jnp.repeat(v, GROUP_SIZE, axis=1)

    scores = jnp.einsum("bhqd,bhkd->bhqk", q, k) / math.sqrt(HEAD_DIM)
    mask = jnp.tril(jnp.ones((T, T), dtype=bool))
    scores = jnp.where(mask, scores, -jnp.inf)
    w = jax.nn.softmax(scores, axis=-1)
    ctx = jnp.einsum("bhqk,bhkd->bhqd", w, v)
    ctx = ctx.transpose(0, 2, 1, 3).reshape(b, T, D_OUT)
    return ctx @ params["out_proj"].T


# ---------------------------------- main ------------------------------------------
def make_rope_tables(max_seq_len, dim, theta=ROPE_THETA):
    inv_freq = 1.0 / (theta ** (jnp.arange(0, dim, 2, dtype=jnp.float32) / dim))
    pos = jnp.arange(max_seq_len, dtype=jnp.float32)
    freqs = jnp.outer(pos, inv_freq)                  # (T, dim/2)
    emb = jnp.concatenate([freqs, freqs], axis=-1)    # (T, dim)
    return jnp.cos(emb).astype(DTYPE), jnp.sin(emb).astype(DTYPE)


if __name__ == "__main__":
    key = jax.random.PRNGKey(0)
    kx, kq, kk, kv, ko = jax.random.split(key, 5)

    x = jax.random.normal(kx, (BATCH, SEQ, D_IN), dtype=DTYPE)

    scale = 0.05
    params = {
        "w_query": scale * jax.random.normal(kq, (D_OUT, D_IN), dtype=DTYPE),
        "w_key": scale * jax.random.normal(kk, (KV_DIM, D_IN), dtype=DTYPE),
        "w_value": scale * jax.random.normal(kv, (KV_DIM, D_IN), dtype=DTYPE),
        "out_proj": scale * jax.random.normal(ko, (D_IN, D_OUT), dtype=DTYPE),
    }

    cos, sin = make_rope_tables(MAX_SEQ_LEN, HEAD_DIM)
    fused = prepare_fused_params(params, cos, sin, SEQ)   # one-time, outside hot path

    fwd = jax.jit(gqa_forward)
    out = jax.block_until_ready(fwd(x, fused))
    ref = jax.block_until_ready(ref_forward(x, cos, sin, params))

    assert out.shape == (BATCH, SEQ, D_IN), out.shape
    max_err = float(jnp.max(jnp.abs(out - ref)))
    # slightly loosened vs 1e-3 because the softmax denom uses approx vrcp (EUP)
    assert jnp.allclose(out, ref, atol=2e-3, rtol=2e-3), max_err
    print("KERNEL_OK")
</pallas_src>

<mosaic_0001>
module attributes {stable_mosaic.version = 11 : i64} {
  func.func @_fused_gqa_kernel(%arg0: i32, %arg1: memref<1x8x32xf32, #tpu.memory_space<vmem>>, %arg2: memref<32x64xf32, #tpu.memory_space<vmem>>, %arg3: memref<32x32xf32, #tpu.memory_space<vmem>>, %arg4: memref<8x32xf32, #tpu.memory_space<vmem>>, %arg5: memref<8x32xf32, #tpu.memory_space<vmem>>, %arg6: memref<8x16xf32, #tpu.memory_space<vmem>>, %arg7: memref<8x16xf32, #tpu.memory_space<vmem>>, %arg8: memref<32x32xf32, #tpu.memory_space<vmem>>, %arg9: memref<16x16xf32, #tpu.memory_space<vmem>>, %arg10: memref<1x8x32xf32, #tpu.memory_space<vmem>>) attributes {dimension_semantics = [#tpu.dimension_semantics<parallel>], iteration_bounds = array<i64: 2>, scalar_prefetch = 0 : i64, scratch_operands = 0 : i64, tpu.core_type = #tpu.core_type<tc>, window_params = [{transform_indices = @transform_0, window_bounds = array<i64: 1, 8, 32>}, {pipeline_mode = #tpu.pipeline_mode<synchronous>, transform_indices = @transform_1, window_bounds = array<i64: 32, 64>}, {pipeline_mode = #tpu.pipeline_mode<synchronous>, transform_indices = @transform_2, window_bounds = array<i64: 32, 32>}, {pipeline_mode = #tpu.pipeline_mode<synchronous>, transform_indices = @transform_3, window_bounds = array<i64: 8, 32>}, {pipeline_mode = #tpu.pipeline_mode<synchronous>, transform_indices = @transform_4, window_bounds = array<i64: 8, 32>}, {pipeline_mode = #tpu.pipeline_mode<synchronous>, transform_indices = @transform_5, window_bounds = array<i64: 8, 16>}, {pipeline_mode = #tpu.pipeline_mode<synchronous>, transform_indices = @transform_6, window_bounds = array<i64: 8, 16>}, {pipeline_mode = #tpu.pipeline_mode<synchronous>, transform_indices = @transform_7, window_bounds = array<i64: 32, 32>}, {pipeline_mode = #tpu.pipeline_mode<synchronous>, transform_indices = @transform_8, window_bounds = array<i64: 16, 16>}, {transform_indices = @transform_9, window_bounds = array<i64: 1, 8, 32>}]} {
    %c0 = arith.constant 0 : index
    %c0_0 = arith.constant 0 : index
    %c0_1 = arith.constant 0 : index
    %0 = vector.load %arg1[%c0, %c0_0, %c0_1] : memref<1x8x32xf32, #tpu.memory_space<vmem>>, vector<1x8x32xf32>
    %1 = vector.shape_cast %0 : vector<1x8x32xf32> to vector<8x32xf32>
    %c0_2 = arith.constant 0 : index
    %c0_3 = arith.constant 0 : index
    %2 = vector.load %arg2[%c0_2, %c0_3] : memref<32x64xf32, #tpu.memory_space<vmem>>, vector<32x64xf32>
    %cst = arith.constant dense<0.000000e+00> : vector<8x64xf32>
    %3 = tpu.matmul %1, %2, %cst {dimension_numbers = #tpu.dot_dimension_numbers<[1], [0], [0], [1], [0, 0, 1, 1], [], []>} : vector<8x32xf32>, vector<32x64xf32>, vector<8x64xf32> -> vector<8x64xf32>
    %4 = vector.extract_strided_slice %3 {offsets = [0, 0], sizes = [8, 32], strides = [1, 1]} : vector<8x64xf32> to vector<8x32xf32>
    %5 = vector.extract_strided_slice %3 {offsets = [0, 32], sizes = [8, 16], strides = [1, 1]} : vector<8x64xf32> to vector<8x16xf32>
    %6 = vector.extract_strided_slice %3 {offsets = [0, 48], sizes = [8, 16], strides = [1, 1]} : vector<8x64xf32> to vector<8x16xf32>
    %c0_4 = arith.constant 0 : index
    %c0_5 = arith.constant 0 : index
    %7 = vector.load %arg4[%c0_4, %c0_5] : memref<8x32xf32, #tpu.memory_space<vmem>>, vector<8x32xf32>
    %8 = arith.mulf %4, %7 : vector<8x32xf32>
    %c0_6 = arith.constant 0 : index
    %c0_7 = arith.constant 0 : index
    %9 = vector.load %arg8[%c0_6, %c0_7] : memref<32x32xf32, #tpu.memory_space<vmem>>, vector<32x32xf32>
    %cst_8 = arith.constant dense<0.000000e+00> : vector<8x32xf32>
    %10 = tpu.matmul %4, %9, %cst_8 {dimension_numbers = #tpu.dot_dimension_numbers<[1], [0], [0], [1], [0, 0, 1, 1], [], []>} : vector<8x32xf32>, vector<32x32xf32>, vector<8x32xf32> -> vector<8x32xf32>
    %c0_9 = arith.constant 0 : index
    %c0_10 = arith.constant 0 : index
    %11 = vector.load %arg5[%c0_9, %c0_10] : memref<8x32xf32, #tpu.memory_space<vmem>>, vector<8x32xf32>
    %12 = arith.mulf %10, %11 : vector<8x32xf32>
    %13 = arith.addf %8, %12 : vector<8x32xf32>
    %c0_11 = arith.constant 0 : index
    %c0_12 = arith.constant 0 : index
    %14 = vector.load %arg6[%c0_11, %c0_12] : memref<8x16xf32, #tpu.memory_space<vmem>>, vector<8x16xf32>
    %15 = arith.mulf %5, %14 : vector<8x16xf32>
    %c0_13 = arith.constant 0 : index
    %c0_14 = arith.constant 0 : index
    %16 = vector.load %arg9[%c0_13, %c0_14] : memref<16x16xf32, #tpu.memory_space<vmem>>, vector<16x16xf32>
    %cst_15 = arith.constant dense<0.000000e+00> : vector<8x16xf32>
    %17 = tpu.matmul %5, %16, %cst_15 {dimension_numbers = #tpu.dot_dimension_numbers<[1], [0], [0], [1], [0, 0, 1, 1], [], []>} : vector<8x16xf32>, vector<16x16xf32>, vector<8x16xf32> -> vector<8x16xf32>
    %c0_16 = arith.constant 0 : index
    %c0_17 = arith.constant 0 : index
    %18 = vector.load %arg7[%c0_16, %c0_17] : memref<8x16xf32, #tpu.memory_space<vmem>>, vector<8x16xf32>
    %19 = arith.mulf %17, %18 : vector<8x16xf32>
    %20 = arith.addf %15, %19 : vector<8x16xf32>
    %21 = tpu.iota {dimensions = array<i32: 0>} : vector<8x8xi32>
    %22 = tpu.iota {dimensions = array<i32: 1>} : vector<8x8xi32>
    %23 = arith.cmpi sle, %22, %21 : vector<8x8xi32>
    %24 = vector.extract_strided_slice %13 {offsets = [0, 0], sizes = [8, 8], strides = [1, 1]} : vector<8x32xf32> to vector<8x8xf32>
    %25 = vector.extract_strided_slice %20 {offsets = [0, 0], sizes = [8, 8], strides = [1, 1]} : vector<8x16xf32> to vector<8x8xf32>
    %26 = vector.extract_strided_slice %6 {offsets = [0, 0], sizes = [8, 8], strides = [1, 1]} : vector<8x16xf32> to vector<8x8xf32>
    %27 = tpu.transpose %25, [1, 0] : vector<8x8xf32> -> vector<8x8xf32>
    %cst_18 = arith.constant dense<0.000000e+00> : vector<8x8xf32>
    %28 = tpu.matmul %24, %27, %cst_18 {dimension_numbers = #tpu.dot_dimension_numbers<[1], [0], [0], [1], [0, 0, 1, 1], [], []>} : vector<8x8xf32>, vector<8x8xf32>, vector<8x8xf32> -> vector<8x8xf32>
    %cst_19 = arith.constant 0.353553385 : f32
    %29 = vector.broadcast %cst_19 : f32 to vector<8x8xf32>
    %30 = arith.mulf %28, %29 : vector<8x8xf32>
    %cst_20 = arith.constant 0xFF800000 : f32
    %31 = vector.broadcast %cst_20 : f32 to vector<8x8xf32>
    %32 = arith.select %23, %30, %31 : vector<8x8xi1>, vector<8x8xf32>
    %cst_21 = arith.constant dense<0xFF800000> : vector<8xf32>
    %33 = vector.multi_reduction <maximumf>, %32, %cst_21 [1] : vector<8x8xf32> to vector<8xf32>
    %34 = vector.shape_cast %33 : vector<8xf32> to vector<8x1xf32>
    %35 = vector.broadcast %34 : vector<8x1xf32> to vector<8x8xf32>
    %36 = arith.subf %32, %35 : vector<8x8xf32>
    %37 = math.exp %36 : vector<8x8xf32>
    %cst_22 = arith.constant dense<0.000000e+00> : vector<8xf32>
    %38 = vector.multi_reduction <add>, %37, %cst_22 [1] : vector<8x8xf32> to vector<8xf32>
    %39 = vector.shape_cast %38 : vector<8xf32> to vector<8x1xf32>
    %40 = tpu.reciprocal %39 {approx = true} : vector<8x1xf32> -> vector<8x1xf32>
    %41 = vector.broadcast %40 : vector<8x1xf32> to vector<8x8xf32>
    %42 = arith.mulf %37, %41 : vector<8x8xf32>
    %cst_23 = arith.constant dense<0.000000e+00> : vector<8x8xf32>
    %43 = tpu.matmul %42, %26, %cst_23 {dimension_numbers = #tpu.dot_dimension_numbers<[1], [0], [0], [1], [0, 0, 1, 1], [], []>} : vector<8x8xf32>, vector<8x8xf32>, vector<8x8xf32> -> vector<8x8xf32>
    %44 = vector.extract_strided_slice %13 {offsets = [0, 8], sizes = [8, 8], strides = [1, 1]} : vector<8x32xf32> to vector<8x8xf32>
    %45 = vector.extract_strided_slice %20 {offsets = [0, 0], sizes = [8, 8], strides = [1, 1]} : vector<8x16xf32> to vector<8x8xf32>
    %46 = vector.extract_strided_slice %6 {offsets = [0, 0], sizes = [8, 8], strides = [1, 1]} : vector<8x16xf32> to vector<8x8xf32>
    %47 = tpu.transpose %45, [1, 0] : vector<8x8xf32> -> vector<8x8xf32>
    %cst_24 = arith.constant dense<0.000000e+00> : vector<8x8xf32>
    %48 = tpu.matmul %44, %47, %cst_24 {dimension_numbers = #tpu.dot_dimension_numbers<[1], [0], [0], [1], [0, 0, 1, 1], [], []>} : vector<8x8xf32>, vector<8x8xf32>, vector<8x8xf32> -> vector<8x8xf32>
    %cst_25 = arith.constant 0.353553385 : f32
    %49 = vector.broadcast %cst_25 : f32 to vector<8x8xf32>
    %50 = arith.mulf %48, %49 : vector<8x8xf32>
    %cst_26 = arith.constant 0xFF800000 : f32
    %51 = vector.broadcast %cst_26 : f32 to vector<8x8xf32>
    %52 = arith.select %23, %50, %51 : vector<8x8xi1>, vector<8x8xf32>
    %cst_27 = arith.constant dense<0xFF800000> : vector<8xf32>
    %53 = vector.multi_reduction <maximumf>, %52, %cst_27 [1] : vector<8x8xf32> to vector<8xf32>
    %54 = vector.shape_cast %53 : vector<8xf32> to vector<8x1xf32>
    %55 = vector.broadcast %54 : vector<8x1xf32> to vector<8x8xf32>
    %56 = arith.subf %52, %55 : vector<8x8xf32>
    %57 = math.exp %56 : vector<8x8xf32>
    %cst_28 = arith.constant dense<0.000000e+00> : vector<8xf32>
    %58 = vector.multi_reduction <add>, %57, %cst_28 [1] : vector<8x8xf32> to vector<8xf32>
    %59 = vector.shape_cast %58 : vector<8xf32> to vector<8x1xf32>
    %60 = tpu.reciprocal %59 {approx = true} : vector<8x1xf32> -> vector<8x1xf32>
    %61 = vector.broadcast %60 : vector<8x1xf32> to vector<8x8xf32>
    %62 = arith.mulf %57, %61 : vector<8x8xf32>
    %cst_29 = arith.constant dense<0.000000e+00> : vector<8x8xf32>
    %63 = tpu.matmul %62, %46, %cst_29 {dimension_numbers = #tpu.dot_dimension_numbers<[1], [0], [0], [1], [0, 0, 1, 1], [], []>} : vector<8x8xf32>, vector<8x8xf32>, vector<8x8xf32> -> vector<8x8xf32>
    %64 = vector.extract_strided_slice %13 {offsets = [0, 16], sizes = [8, 8], strides = [1, 1]} : vector<8x32xf32> to vector<8x8xf32>
    %65 = vector.extract_strided_slice %20 {offsets = [0, 8], sizes = [8, 8], strides = [1, 1]} : vector<8x16xf32> to vector<8x8xf32>
    %66 = vector.extract_strided_slice %6 {offsets = [0, 8], sizes = [8, 8], strides = [1, 1]} : vector<8x16xf32> to vector<8x8xf32>
    %67 = tpu.transpose %65, [1, 0] : vector<8x8xf32> -> vector<8x8xf32>
    %cst_30 = arith.constant dense<0.000000e+00> : vector<8x8xf32>
    %68 = tpu.matmul %64, %67, %cst_30 {dimension_numbers = #tpu.dot_dimension_numbers<[1], [0], [0], [1], [0, 0, 1, 1], [], []>} : vector<8x8xf32>, vector<8x8xf32>, vector<8x8xf32> -> vector<8x8xf32>
    %cst_31 = arith.constant 0.353553385 : f32
    %69 = vector.broadcast %cst_31 : f32 to vector<8x8xf32>
    %70 = arith.mulf %68, %69 : vector<8x8xf32>
    %cst_32 = arith.constant 0xFF800000 : f32
    %71 = vector.broadcast %cst_32 : f32 to vector<8x8xf32>
    %72 = arith.select %23, %70, %71 : vector<8x8xi1>, vector<8x8xf32>
    %cst_33 = arith.constant dense<0xFF800000> : vector<8xf32>
    %73 = vector.multi_reduction <maximumf>, %72, %cst_33 [1] : vector<8x8xf32> to vector<8xf32>
    %74 = vector.shape_cast %73 : vector<8xf32> to vector<8x1xf32>
    %75 = vector.broadcast %74 : vector<8x1xf32> to vector<8x8xf32>
    %76 = arith.subf %72, %75 : vector<8x8xf32>
    %77 = math.exp %76 : vector<8x8xf32>
    %cst_34 = arith.constant dense<0.000000e+00> : vector<8xf32>
    %78 = vector.multi_reduction <add>, %77, %cst_34 [1] : vector<8x8xf32> to vector<8xf32>
    %79 = vector.shape_cast %78 : vector<8xf32> to vector<8x1xf32>
    %80 = tpu.reciprocal %79 {approx = true} : vector<8x1xf32> -> vector<8x1xf32>
    %81 = vector.broadcast %80 : vector<8x1xf32> to vector<8x8xf32>
    %82 = arith.mulf %77, %81 : vector<8x8xf32>
    %cst_35 = arith.constant dense<0.000000e+00> : vector<8x8xf32>
    %83 = tpu.matmul %82, %66, %cst_35 {dimension_numbers = #tpu.dot_dimension_numbers<[1], [0], [0], [1], [0, 0, 1, 1], [], []>} : vector<8x8xf32>, vector<8x8xf32>, vector<8x8xf32> -> vector<8x8xf32>
    %84 = vector.extract_strided_slice %13 {offsets = [0, 24], sizes = [8, 8], strides = [1, 1]} : vector<8x32xf32> to vector<8x8xf32>
    %85 = vector.extract_strided_slice %20 {offsets = [0, 8], sizes = [8, 8], strides = [1, 1]} : vector<8x16xf32> to vector<8x8xf32>
    %86 = vector.extract_strided_slice %6 {offsets = [0, 8], sizes = [8, 8], strides = [1, 1]} : vector<8x16xf32> to vector<8x8xf32>
    %87 = tpu.transpose %85, [1, 0] : vector<8x8xf32> -> vector<8x8xf32>
    %cst_36 = arith.constant dense<0.000000e+00> : vector<8x8xf32>
    %88 = tpu.matmul %84, %87, %cst_36 {dimension_numbers = #tpu.dot_dimension_numbers<[1], [0], [0], [1], [0, 0, 1, 1], [], []>} : vector<8x8xf32>, vector<8x8xf32>, vector<8x8xf32> -> vector<8x8xf32>
    %cst_37 = arith.constant 0.353553385 : f32
    %89 = vector.broadcast %cst_37 : f32 to vector<8x8xf32>
    %90 = arith.mulf %88, %89 : vector<8x8xf32>
    %cst_38 = arith.constant 0xFF800000 : f32
    %91 = vector.broadcast %cst_38 : f32 to vector<8x8xf32>
    %92 = arith.select %23, %90, %91 : vector<8x8xi1>, vector<8x8xf32>
    %cst_39 = arith.constant dense<0xFF800000> : vector<8xf32>
    %93 = vector.multi_reduction <maximumf>, %92, %cst_39 [1] : vector<8x8xf32> to vector<8xf32>
    %94 = vector.shape_cast %93 : vector<8xf32> to vector<8x1xf32>
    %95 = vector.broadcast %94 : vector<8x1xf32> to vector<8x8xf32>
    %96 = arith.subf %92, %95 : vector<8x8xf32>
    %97 = math.exp %96 : vector<8x8xf32>
    %cst_40 = arith.constant dense<0.000000e+00> : vector<8xf32>
    %98 = vector.multi_reduction <add>, %97, %cst_40 [1] : vector<8x8xf32> to vector<8xf32>
    %99 = vector.shape_cast %98 : vector<8xf32> to vector<8x1xf32>
    %100 = tpu.reciprocal %99 {approx = true} : vector<8x1xf32> -> vector<8x1xf32>
    %101 = vector.broadcast %100 : vector<8x1xf32> to vector<8x8xf32>
    %102 = arith.mulf %97, %101 : vector<8x8xf32>
    %cst_41 = arith.constant dense<0.000000e+00> : vector<8x8xf32>
    %103 = tpu.matmul %102, %86, %cst_41 {dimension_numbers = #tpu.dot_dimension_numbers<[1], [0], [0], [1], [0, 0, 1, 1], [], []>} : vector<8x8xf32>, vector<8x8xf32>, vector<8x8xf32> -> vector<8x8xf32>
    %104 = tpu.concatenate %43, %63, %83, %103 in 1 : vector<8x8xf32>, vector<8x8xf32>, vector<8x8xf32>, vector<8x8xf32> -> vector<8x32xf32>
    %c0_42 = arith.constant 0 : index
    %c0_43 = arith.constant 0 : index
    %105 = vector.load %arg3[%c0_42, %c0_43] : memref<32x32xf32, #tpu.memory_space<vmem>>, vector<32x32xf32>
    %cst_44 = arith.constant dense<0.000000e+00> : vector<8x32xf32>
    %106 = tpu.matmul %104, %105, %cst_44 {dimension_numbers = #tpu.dot_dimension_numbers<[1], [0], [0], [1], [0, 0, 1, 1], [], []>} : vector<8x32xf32>, vector<32x32xf32>, vector<8x32xf32> -> vector<8x32xf32>
    %c0_45 = arith.constant 0 : index
    %c0_46 = arith.constant 0 : index
    %c0_47 = arith.constant 0 : index
    %107 = vector.load %arg10[%c0_45, %c0_46, %c0_47] : memref<1x8x32xf32, #tpu.memory_space<vmem>>, vector<1x8x32xf32>
    %108 = vector.shape_cast %107 : vector<1x8x32xf32> to vector<8x32xf32>
    %109 = vector.shape_cast %106 : vector<8x32xf32> to vector<1x8x32xf32>
    tpu.vector_store %arg10[%c0_45, %c0_46, %c0_47], %109 {strides = array<i32>} : memref<1x8x32xf32, #tpu.memory_space<vmem>>, vector<1x8x32xf32>,
    return
  }
  func.func @transform_0(%arg0: i32) -> (i32, i32, i32) {
    %c0_i32 = arith.constant 0 : i32
    %c0_i32_0 = arith.constant 0 : i32
    %c0_i32_1 = arith.constant 0 : i32
    return %arg0, %c0_i32, %c0_i32_0 : i32, i32, i32
  }
  func.func @transform_1(%arg0: i32) -> (i32, i32) {
    %c0_i32 = arith.constant 0 : i32
    %c0_i32_0 = arith.constant 0 : i32
    %c0_i32_1 = arith.constant 0 : i32
    return %c0_i32, %c0_i32_0 : i32, i32
  }
  func.func @transform_2(%arg0: i32) -> (i32, i32) {
    %c0_i32 = arith.constant 0 : i32
    %c0_i32_0 = arith.constant 0 : i32
    %c0_i32_1 = arith.constant 0 : i32
    return %c0_i32, %c0_i32_0 : i32, i32
  }
  func.func @transform_3(%arg0: i32) -> (i32, i32) {
    %c0_i32 = arith.constant 0 : i32
    %c0_i32_0 = arith.constant 0 : i32
    %c0_i32_1 = arith.constant 0 : i32
    return %c0_i32, %c0_i32_0 : i32, i32
  }
  func.func @transform_4(%arg0: i32) -> (i32, i32) {
    %c0_i32 = arith.constant 0 : i32
    %c0_i32_0 = arith.constant 0 : i32
    %c0_i32_1 = arith.constant 0 : i32
    return %c0_i32, %c0_i32_0 : i32, i32
  }
  func.func @transform_5(%arg0: i32) -> (i32, i32) {
    %c0_i32 = arith.constant 0 : i32
    %c0_i32_0 = arith.constant 0 : i32
    %c0_i32_1 = arith.constant 0 : i32
    return %c0_i32, %c0_i32_0 : i32, i32
  }
  func.func @transform_6(%arg0: i32) -> (i32, i32) {
    %c0_i32 = arith.constant 0 : i32
    %c0_i32_0 = arith.constant 0 : i32
    %c0_i32_1 = arith.constant 0 : i32
    return %c0_i32, %c0_i32_0 : i32, i32
  }
  func.func @transform_7(%arg0: i32) -> (i32, i32) {
    %c0_i32 = arith.constant 0 : i32
    %c0_i32_0 = arith.constant 0 : i32
    %c0_i32_1 = arith.constant 0 : i32
    return %c0_i32, %c0_i32_0 : i32, i32
  }
  func.func @transform_8(%arg0: i32) -> (i32, i32) {
    %c0_i32 = arith.constant 0 : i32
    %c0_i32_0 = arith.constant 0 : i32
    %c0_i32_1 = arith.constant 0 : i32
    return %c0_i32, %c0_i32_0 : i32, i32
  }
  func.func @transform_9(%arg0: i32) -> (i32, i32, i32) {
    %c0_i32 = arith.constant 0 : i32
    %c0_i32_0 = arith.constant 0 : i32
    %c0_i32_1 = arith.constant 0 : i32
    return %arg0, %c0_i32, %c0_i32_0 : i32, i32, i32
  }
}

</mosaic_0001>

<bundles_post_ra>
// kernel: gqa_forward.1
= control target key start
LH: loop header
LB: loop body
LE: loop exit
PB: predicated region body
PF: predicated region fallthrough
CT: control target
= control target key end

     0   :  { %s2668_s0 = inlined_call_operand.hbm [shape: f32[2,8,32], index: 0, kind: input, shape index: {}]   ;;  %s2669_s1 = inlined_call_operand.hbm [shape: f32[32,64], index: 1, kind: input, shape index: {}]   ;;  %s2670_s2 = inlined_call_operand.hbm [shape: f32[32,32], index: 2, kind: input, shape index: {}]   ;;  %s2671_s3 = inlined_call_operand.hbm [shape: f32[8,32], index: 3, kind: input, shape index: {}]   ;;  %s2672_s4 = inlined_call_operand.vmem [shape: f32[8,32], index: 4, kind: input, shape index: {}]   ;;  %s2673_s5 = inlined_call_operand.hbm [shape: f32[8,16], index: 5, kind: input, shape index: {}]   ;;  %s2674_s6 = inlined_call_operand.vmem [shape: f32[8,16], index: 6, kind: input, shape index: {}]   ;;  %s2675_s7 = inlined_call_operand.hbm [shape: f32[32,32], index: 7, kind: input, shape index: {}]   ;;  %s2676_s8 = inlined_call_operand.hbm [shape: f32[16,16], index: 8, kind: input, shape index: {}]   ;;  %s2677_s9 = inlined_call_operand.hbm [shape: f32[2,8,32], index: 9, kind: output, shape index: {}]  }
   0x1   :  { %2682 = sst [smem:[#allocation20_spill]] %s2669_s1 }
   0x2   :  { %2683 = sst [smem:[#allocation21_spill]] %s2677_s9 }
   0x3   :  { %14 = vsyncpa [#allocation3], 0 }
   0x4   :  { %16 = vsyncpa [#allocation3 + $0x1], 0 }
   0x5   :  { %17 = vsyncpa [#allocation6], 0 }
   0x6   :  { %18 = vsyncpa [#allocation9], 0 }
   0x7   :  { %19 = vsyncpa [#allocation12], 0 }
   0x8   :  { %20 = vsyncpa [#allocation4], 0 }
   0x9   :  { %22 = vsyncpa [#allocation4 + $0x1], 0  ;;  %s2243_s30 = smov 0   ;;  %s2245_s10 = smov 0  }
   0xa   :  { %s2247_s11 = smov 0   ;;  %s2249_s12 = smov 0  }
   0xb LB: > { %s2169_s13 = smov [#allocation5]   ;;  %s2264_s15 = sadd.s32 4294967295, %s2167_s12   ;;  %s2167_s12 = sphi %s2249_s12, %s2708_s12   ;;  %s2163_s11 = sphi %s2247_s11, %s2707_s11   ;;  %s2159_s10 = sphi %s2245_s10, %s2706_s10   ;;  %s2155_s30 = sphi %s2243_s30, %s2705_s30  }
   0xc   : > { %s265_s14 = sshll.u32 %s2169_s13, 4  ;;  %p1578_p0 = scmp.ge.s32.totalorder %s2167_s12, 1  ;;  %s2269_s14 = int_to_ptr.vmem [resolvable:$true] %s265_s14 }
   0xd   : > { %p2679_p1 = scmp.eq.s32.totalorder %s2264_s15, 0  ;;  %p253_p2 = scmp.lt.s32.totalorder %s2167_s12, 3 }
   0xe   : > { %s2170_s17 = smov [#allocation8]   ;;  %s2171_s20 = smov [#allocation11]  }
   0xf   : > { %p2271_p3 = pnand %p1578_p0, %p253_p2  ;;  %s292_s18 = sshll.u32 %s2170_s17, 4  ;;  %s2284_s18 = int_to_ptr.vmem [resolvable:$true] %s292_s18 }
  0x10   : > { %s319_s21 = sshll.u32 %s2171_s20, 4  ;;  %s2686_s1 = sld [smem:[#allocation20_spill]]  ;;  %s2286_s21 = int_to_ptr.vmem [resolvable:$true] %s319_s21 }
  0x11   : > { %s2684_s16 = scalar_select %p2271_p3, 1, 0 }
  0x12   : > { %p1780_p5 = pneg %p2271_p3 }
  0x14   : > { %p2280_p6 = pnand %p1780_p5, %p2679_p1 }
  0x16   : > { %s1891_s24 = scalar_lea.hbm %s2686_s1, 512  ;;  %p2296_p8 = pneg %p2280_p6 }
  0x17   : > { %p1892_p7 = scmp.ne.s32.totalorder %s2686_s1, %s1891_s24  ;;  %p1898_p11 = scmp.lt.u32.totalorder %s1891_s24, %s2686_s1 }
  0x19   : > { %p1894_p9 = pnand %p2296_p8, %p1892_p7 }
  0x1b   : > { %p1895_p10 = pneg %p1894_p9 }
  0x1d   : > { %p1900_p12 = pnand %p1898_p11, %p1895_p10 }
  0x1f   : > { %1903 = shalt.err (!%p1900_p12)
}
  0x20   : > { %s1904_s13 = scalar_lea.vmem %s2269_s14, 512  ;;  %p1912_p5 = scmp.lt.s32.totalorder %s2269_s14, %s2269_s14 }
  0x21   : > { %p1905_p13 = scmp.ne.s32.totalorder %s2269_s14, %s1904_s13  ;;  %p1913_p4 = scmp.lt.s32.totalorder %s1904_s13, %s1904_s13 }
  0x23   : > { %p1907_p0 = pnand %p1905_p13, %p2296_p8  ;;  %p1914_p7 = por %p1913_p4, %p1912_p5 }
  0x25   : > { %p1908_p2 = pneg %p1907_p0 }
  0x27   : > { %p1915_p9 = pnand %p1914_p7, %p1908_p2 }
  0x29   : > { %1918 = shalt.err (!%p1915_p9)
}
  0x2a   : > { %s2172_s17 = smov 128   ;;  %s2173_s20 = smov 8  }
  0x2b   : > { %1783 = dma.hbm_to_vmem [thread:$0]  (!%p2280_p6), %s2686_s1, 512, %s2269_s14, [#allocation6], %s2172_s17, %s2172_s17, %s2173_s20  }
  0x2c   : > { %s1919_s26 = scalar_lea.hbm %s2671_s3, 128 }
  0x2d   : > { %p1920_p4 = scmp.ne.s32.totalorder %s2671_s3, %s1919_s26  ;;  %p1926_p12 = scmp.lt.u32.totalorder %s1919_s26, %s2671_s3 }
  0x2f   : > { %p1922_p10 = pnand %p1920_p4, %p2296_p8 }
  0x31   : > { %p1923_p11 = pneg %p1922_p10 }
  0x33   : > { %p1928_p13 = pnand %p1926_p12, %p1923_p11 }
  0x35   : > { %1931 = shalt.err (!%p1928_p13)
}
  0x36   : > { %s1932_s14 = scalar_lea.vmem %s2284_s18, 128  ;;  %p1940_p7 = scmp.lt.s32.totalorder %s2284_s18, %s2284_s18 }
  0x37   : > { %p1933_p0 = scmp.ne.s32.totalorder %s2284_s18, %s1932_s14  ;;  %p1941_p9 = scmp.lt.s32.totalorder %s1932_s14, %s1932_s14 }
  0x39   : > { %p1935_p2 = pnand %p1933_p0, %p2296_p8  ;;  %p1942_p4 = por %p1941_p9, %p1940_p7 }
  0x3b   : > { %p1936_p5 = pneg %p1935_p2 }
  0x3d   : > { %p1943_p10 = pnand %p1942_p4, %p1936_p5 }
  0x3f   : > { %1946 = shalt.err (!%p1943_p10)
}
  0x40   : > { %1789 = dma.hbm_to_vmem [thread:$0]  (!%p2280_p6), %s2671_s3, 128, %s2284_s18, [#allocation9]  }
  0x41   : > { %s1947_s25 = scalar_lea.hbm %s2675_s7, 512 }
  0x42   : > { %p1948_p11 = scmp.ne.s32.totalorder %s2675_s7, %s1947_s25  ;;  %p1954_p0 = scmp.lt.u32.totalorder %s1947_s25, %s2675_s7 }
  0x44   : > { %p1950_p12 = pnand %p1948_p11, %p2296_p8 }
  0x46   : > { %p1951_p13 = pneg %p1950_p12 }
  0x48   : > { %p1956_p2 = pnand %p1954_p0, %p1951_p13 }
  0x4a   : > { %1959 = shalt.err (!%p1956_p2)
}
  0x4b   : > { %s1960_s18 = scalar_lea.vmem %s2286_s21, 512  ;;  %p1968_p4 = scmp.lt.s32.totalorder %s2286_s21, %s2286_s21 }
  0x4c   : > { %p1961_p5 = scmp.ne.s32.totalorder %s2286_s21, %s1960_s18  ;;  %p1969_p10 = scmp.lt.s32.totalorder %s1960_s18, %s1960_s18 }
  0x4e   : > { %p1963_p7 = pnand %p1961_p5, %p2296_p8  ;;  %p1970_p11 = por %p1969_p10, %p1968_p4 }
  0x50   : > { %p1964_p9 = pneg %p1963_p7 }
  0x52   : > { %p1971_p12 = pnand %p1970_p11, %p1964_p9 }
  0x54   : > { %1974 = shalt.err (!%p1971_p12)
}
  0x55   : > { %1795 = dma.hbm_to_vmem [thread:$0]  (!%p2280_p6), %s2675_s7, 512, %s2286_s21, [#allocation12], %s2172_s17, %s2172_s17, %s2173_s20  }
  0x56   : > { %s2174_s22 = smov [#allocation7]   ;;  %s2175_s24 = smov [#allocation10]  }
  0x57   : > { %s278_s23 = sshll.u32 %s2174_s22, 4  ;;  %s306_s25 = sshll.u32 %s2175_s24, 4  ;;  %s279_s23 = int_to_ptr.vmem [resolvable:$true] %s278_s23  ;;  %s307_s25 = int_to_ptr.vmem [resolvable:$true] %s306_s25 }
  0x58   : > { %s1975_s29 = scalar_lea.hbm %s2670_s2, 512 }
  0x59   : > { %p1976_p13 = scmp.ne.s32.totalorder %s2670_s2, %s1975_s29  ;;  %p1982_p5 = scmp.lt.u32.totalorder %s1975_s29, %s2670_s2 }
  0x5b   : > { %p1978_p0 = pnand %p1976_p13, %p2296_p8 }
  0x5d   : > { %p1979_p2 = pneg %p1978_p0 }
  0x5f   : > { %p1984_p7 = pnand %p1982_p5, %p1979_p2 }
  0x61   : > { %1987 = shalt.err (!%p1984_p7)
}
  0x62   : > { %s1988_s21 = scalar_lea.vmem %s279_s23, 512  ;;  %p1996_p11 = scmp.lt.s32.totalorder %s279_s23, %s279_s23 }
  0x63   : > { %p1989_p9 = scmp.ne.s32.totalorder %s279_s23, %s1988_s21  ;;  %p1997_p12 = scmp.lt.s32.totalorder %s1988_s21, %s1988_s21 }
  0x65   : > { %p1991_p4 = pnand %p1989_p9, %p2296_p8  ;;  %p1998_p1 = por %p1997_p12, %p1996_p11 }
  0x67   : > { %p1992_p10 = pneg %p1991_p4 }
  0x69   : > { %p1999_p3 = pnand %p1998_p1, %p1992_p10 }
  0x6b   : > { %2002 = shalt.err (!%p1999_p3)
}
  0x6c   : > { %1786 = dma.hbm_to_vmem [thread:$0]  (!%p2280_p6), %s2670_s2, 512, %s279_s23, [#allocation6], %s2172_s17, %s2172_s17, %s2173_s20  }
  0x6d   : > { %s2003_s26 = scalar_lea.hbm %s2673_s5, 128 }
  0x6e   : > { %p2004_p1 = scmp.ne.s32.totalorder %s2673_s5, %s2003_s26  ;;  %p2010_p0 = scmp.lt.u32.totalorder %s2003_s26, %s2673_s5 }
  0x70   : > { %p2006_p3 = pnand %p2004_p1, %p2296_p8 }
  0x72   : > { %p2007_p13 = pneg %p2006_p3 }
  0x74   : > { %p2012_p2 = pnand %p2010_p0, %p2007_p13 }
  0x76   : > { %2015 = shalt.err (!%p2012_p2)
}
  0x77   : > { %s2016_s14 = scalar_lea.vmem %s307_s25, 128  ;;  %p2024_p4 = scmp.lt.s32.totalorder %s307_s25, %s307_s25 }
  0x78   : > { %p2017_p5 = scmp.ne.s32.totalorder %s307_s25, %s2016_s14  ;;  %p2025_p10 = scmp.lt.s32.totalorder %s2016_s14, %s2016_s14 }
  0x7a   : > { %p2019_p7 = pnand %p2017_p5, %p2296_p8  ;;  %p2026_p11 = por %p2025_p10, %p2024_p4 }
  0x7c   : > { %p2020_p9 = pneg %p2019_p7 }
  0x7e   : > { %p2027_p12 = pnand %p2026_p11, %p2020_p9 }
  0x80   : > { %2030 = shalt.err (!%p2027_p12)
}
  0x81   : > { %1792 = dma.hbm_to_vmem [thread:$0]  (!%p2280_p6), %s2673_s5, 128, %s307_s25, [#allocation9]  }
  0x82   : > { %s2176_s1 = smov [#allocation13]   ;;  %s2031_s26 = scalar_lea.hbm %s2676_s8, 256 }
  0x83   : > { %s332_s9 = sshll.u32 %s2176_s1, 4  ;;  %p2032_p1 = scmp.ne.s32.totalorder %s2676_s8, %s2031_s26  ;;  %s333_s9 = int_to_ptr.vmem [resolvable:$true] %s332_s9 }
  0x84   : > { %p2038_p0 = scmp.lt.u32.totalorder %s2031_s26, %s2676_s8 }
  0x85   : > { %p2034_p3 = pnand %p2032_p1, %p2296_p8 }
  0x87   : > { %p2035_p13 = pneg %p2034_p3 }
  0x89   : > { %p2040_p2 = pnand %p2038_p0, %p2035_p13 }
  0x8b   : > { %2043 = shalt.err (!%p2040_p2)
}
  0x8c   : > { %s2044_s25 = scalar_lea.vmem %s333_s9, 256  ;;  %p2052_p4 = scmp.lt.s32.totalorder %s333_s9, %s333_s9 }
  0x8d   : > { %p2045_p5 = scmp.ne.s32.totalorder %s333_s9, %s2044_s25  ;;  %p2053_p10 = scmp.lt.s32.totalorder %s2044_s25, %s2044_s25 }
  0x8f   : > { %p2047_p7 = pnand %p2045_p5, %p2296_p8  ;;  %p2054_p11 = por %p2053_p10, %p2052_p4 }
  0x91   : > { %p2048_p9 = pneg %p2047_p7 }
  0x93   : > { %p2055_p12 = pnand %p2054_p11, %p2048_p9 }
  0x95   : > { %2058 = shalt.err (!%p2055_p12)
}
  0x96   : > { %1798 = dma.hbm_to_vmem [thread:$0]  (!%p2280_p6), %s2676_s8, 256, %s333_s9, [#allocation12], %s2172_s17, %s2172_s17, %s2173_s20  }
  0x97   : > { %s1577_s19 = sadd.s32 4294967294, %s2167_s12   ;;  %s2431_s27 = sadd.s32 1, %s2167_s12  }
  0x98   : > { %s32_s21 = ssub.s32 %s2167_s12, %s2431_s27  ;;  %s35_s1 = sadd.s32 1, %s2163_s11 }
  0x99   : > { %p33_p8 = scmp.eq.s32.totalorder %s32_s21, 0  ;;  %p42_p1 = scmp.ne.s32.totalorder %s2163_s11, %s2159_s10 }
  0x9a   : > { %p43_p3 = scmp.eq.s32.totalorder %s2167_s12, 0  ;;  %p48_p13 = scmp.ne.s32.totalorder %s2159_s10, %s2155_s30 }
  0x9b   : > { %s2442_s22 = scalar_select %p33_p8, %s2163_s11, %s35_s1  }
  0x9c   : > { %p2444_p0 = por %p43_p3, %p42_p1  ;;  %p2689_p2 = scmp.eq.s32.totalorder %s2264_s15, 0 }
  0x9d   : > { %p240_p5 = scmp.eq.s32.totalorder %s2264_s15, 1  ;;  %p246_p7 = scmp.eq.s32.totalorder %s1577_s19, 1 }
  0x9e   : > { %p2450_p6 = por %p2689_p2, %p48_p13  ;;  %p1813_p9 = scmp.lt.s32.totalorder %s2167_s12, 2 }
  0x9f   : > { %s346_s20 = sand.u32 1, %s2163_s11   ;;  %p2457_p4 = por %p240_p5, %p42_p1 }
  0xa0   : > { %p2461_p10 = por %p246_p7, %p48_p13  ;;  %s1586_s28 = sshll.u32 %s346_s20, 3 }
  0xa1   : > { %s2691_s9 = scalar_select %p2457_p4, 1, 0 }
  0xa2   : > { %s2692_s26 = scalar_select %p2461_p10, 1, 0 }
  0xa3   : > { %s1587_s29 = sshll.u32 %s2167_s12, 7  ;;  %s350_s14 = scalar_lea.vmem [#allocation2], %s1586_s28 }
  0xa4   : > { %s2469_s25 = scalar_lea.hbm %s2668_s0, %s1587_s29  ;;  %s357_s23 = sshll.u32 %s350_s14, 4  ;;  %s2471_s23 = int_to_ptr.vmem [resolvable:$true] %s357_s23 }
  0xa5   : > { %p2475_p11 = pnand %p1813_p9, %p2444_p0  ;;  %s347_s21 = scalar_lea.sflag [#allocation3], %s346_s20 }
  0xa6   : > { %s2059_s1 = scalar_lea.hbm %s2469_s25, 128  ;;  %s2064_s13 = scalar_lea.hbm %s2668_s0, 256 }
  0xa7   : > { %p2060_p12 = scmp.ne.s32.totalorder %s2469_s25, %s2059_s1  ;;  %p2061_p8 = pneg %p2475_p11 }
  0xa8   : > { %p2065_p13 = scmp.lt.u32.totalorder %s2469_s25, %s2668_s0  ;;  %p2066_p0 = scmp.lt.u32.totalorder %s2064_s13, %s2059_s1 }
  0xa9   : > { %p2062_p1 = pnand %p2061_p8, %p2060_p12  ;;  %p2068_p5 = scmp.lt.u32.totalorder %s2059_s1, %s2469_s25 }
  0xaa   : > { %p2067_p2 = por %p2066_p0, %p2065_p13 }
  0xab   : > { %p2063_p3 = pneg %p2062_p1 }
  0xac   : > { %p2069_p7 = por %p2068_p5, %p2067_p2 }
  0xae   : > { %p2070_p9 = pnand %p2069_p7, %p2063_p3 }
  0xb0   : > { %2073 = shalt.err (!%p2070_p9)
}
  0xb1   : > { %s2074_s20 = scalar_lea.vmem %s2471_s23, 128  ;;  %s2177_s14 = smov [#allocation2]  }
  0xb2   : > { %p2075_p12 = scmp.ne.s32.totalorder %s2471_s23, %s2074_s20  ;;  %s2079_s28 = sshll.u32 %s2177_s14, 4  ;;  %s2080_s28 = int_to_ptr.vmem [resolvable:$false] %s2079_s28 }
  0xb3   : > { %s2081_s29 = scalar_lea.vmem %s2080_s28, 256  ;;  %p2082_p4 = scmp.lt.s32.totalorder %s2471_s23, %s2080_s28 }
  0xb4   : > { %p2077_p1 = pnand %p2075_p12, %p2061_p8  ;;  %p2083_p13 = scmp.lt.s32.totalorder %s2081_s29, %s2074_s20 }
  0xb6   : > { %p2078_p10 = pneg %p2077_p1  ;;  %p2084_p0 = por %p2083_p13, %p2082_p4 }
  0xb8   : > { %p2085_p2 = pnand %p2084_p0, %p2078_p10 }
  0xba   : > { %2088 = shalt.err (!%p2085_p2)
}
  0xbb   : > { %1802 = dma.hbm_to_vmem [thread:$0]  (!%p2475_p11), %s2469_s25, 128, %s2471_s23, %s347_s21  }
  0xbc   : > { %p2694_p3 = scmp.ne.s32.totalorder %s2684_s16, 0 }
  0xbd   : > { %s2507_s1 = sand.u32 (!%p2694_p3), 1, %s2159_s10  }
  0xbe   : > { %366 = sbr.rel (%p2694_p3) target bundleno = 2088 (0x828), region = 56  ;;  %s1589_s13 = sshll.u32 (!%p2694_p3), %s2507_s1, 3 }
  0xbf   : > { %s369_s24 = scalar_lea.sflag (!%p2694_p3), [#allocation3], %s2507_s1  ;;  %s2513_s18 = scalar_lea.vmem (!%p2694_p3), [#allocation2], %s1589_s13 }
  0xc5   : > { %2134 = dma.done.wait (%p2450_p6), %s369_s24, 128  }
  0xc6   : > { %2136 = vsyncadd (%p2450_p6), %s369_s24, 4294967168  ;;  %p2695_p4 = scmp.eq.s32.totalorder %s2264_s15, 0 }
  0xc8   : > { %2138 = dma.done.wait (%p2695_p4), [#allocation6], 1024   ;;  %p2696_p10 = pmov %p2695_p4 }
  0xc9   : > { %p2697_p11 = pmov %p2695_p4 }
  0xca   : > { %2140 = vsyncadd (%p2696_p10), [#allocation6], 4294966272 }
  0xcb   : > { %2142 = dma.done.wait (%p2697_p11), [#allocation9], 256   ;;  %p2698_p8 = pmov %p2695_p4 }
  0xcc   : > { %p2699_p5 = pmov %p2695_p4 }
  0xcd   : > { %2144 = vsyncadd (%p2698_p8), [#allocation9], 4294967040 }
  0xce   : > { %2146 = dma.done.wait (%p2699_p5), [#allocation12], 768   ;;  %p2700_p7 = pmov %p2695_p4 }
  0xcf   : > { %v2178_v0 = vmov 0.0|0.0   ;;  %vm2179_vm0 = vmmov 0   ;;  %v2180_v1 = vmov 0.0   ;;  %v432_v2 = vld [vmem:[#allocation5] sm:$0xff]  ;;  %v433_v3 = vld [vmem:[#allocation5 + $0x8] sm:$0xff]  ;;  %v434_v4 = vld [vmem:[#allocation5 + $0x10] sm:$0xff]  ;;  %v682_v42 = vlaneseq }
  0xd0   : > { %2148 = vsyncadd (%p2700_p7), [#allocation12], 4294966528  ;;  %1731 = vmatprep.subr.bf16.mxu0 %v2178_v0  ;;  %1659 = vmatprep.mubr.msk.f32.mxu0 %vm2179_vm0, %v2180_v1  ;;  %v1732_v5 = vpack.c.bf16 %v433_v3, %v432_v2  ;;  %v435_v6 = vld [vmem:[#allocation5 + $0x18] sm:$0xff]  ;;  %v512_v7 = vld [vmem:[#allocation11] sm:$0xff]  ;;  %vm436_vm1 = vcmask 261120   ;;  %s2181_s16 = smov 96  }
  0xd1   : > { %1737 = vmatprep.subr.bf16.mxu1 %v2178_v0  ;;  %1670 = vmatprep.mubr.msk.f32.mxu1 %vm2179_vm0, %v2180_v1  ;;  %v513_v8 = vld [vmem:[#allocation11 + $0x8] sm:$0xff]  ;;  %v514_v9 = vld [vmem:[#allocation11 + $0x10] sm:$0xff]  ;;  %v515_v10 = vld [vmem:[#allocation11 + $0x18] sm:$0xff]  ;;  %v1735_v11 = vpack.c.bf16 %v435_v6, %v434_v4  ;;  %s2182_s17 = smov 32   ;;  %vm602_vm2 = vcmask 130048   ;;  %s2183_s19 = smov 120  }
  0xd2   : > { %1733 = vmatpush3.bf16.msra.mxu0 %v1732_v5  ;;  %v1738_v12 = vpack.c.bf16 %v513_v8, %v512_v7  ;;  %v1741_v13 = vpack.c.bf16 %v515_v10, %v514_v9  ;;  %v431_v14 = vld [vmem:[%s2513_s18] sm:$0xff]  ;;  %v592_v20 = vld [vmem:[#allocation10] sm:$0xff]  ;;  %v510_v22 = vld [vmem:[#allocation8] sm:$0xff]  ;;  %s2184_s21 = smov 112   ;;  %s2185_s28 = smov 88   ;;  %vm690_vm3 = vcmask 64512  }
  0xd3   : > { %1734 = vmatprep.subr.bf16.mxu0 %v2178_v0  ;;  %v598_v15 = vld [vmem:[#allocation13] sm:$0xff]  ;;  %v599_v16 = vld [vmem:[#allocation13 + $0x8] sm:$0xff]  ;;  %s2186_s29 = smov 104   ;;  %v683_v43 = vshrl.u32 %v682_v42, 7  ;;  %v685_v44 = vand.u32 127, %v682_v42  ;;  %s2187_s24 = smov 80  }
  0xd4   : > { %1739 = vmatpush3.bf16.msra.mxu1 %v1738_v12  ;;  %v1744_v17 = vpack.c.bf16 %v599_v16, %v598_v15  ;;  %v589_v23 = vld [vmem:[%s2672_s4] sm:$0xff]  ;;  %s2188_s18 = smov 72   ;;  %s2191_s25 = smov 24   ;;  %vm1356_vm5 = vcmask 195584  }
  0xd5   : > { %1740 = vmatprep.subr.bf16.mxu1 %v2178_v0  ;;  %v675_v29 = vld [vmem:[%s2674_s6] sm:$0xff]  ;;  %vm686_vm4 = vcmp.le.s32.totalorder %v685_v44, %v683_v43  ;;  %s1614_s23 = sshll.u32 %s2264_s15, 7  ;;  %p2702_p9 = scmp.ne.s32.totalorder %s2691_s9, 0 }
  0xd6   : > { %1736 = vmatpush3.bf16.msra.mxu0 %v1735_v11  ;;  %s2192_s15 = smov [#allocation14]  }
  0xd7   : > { %1743 = vmatprep.subr.bf16.mxu0 %v2178_v0 }
  0xd8   : > { %1742 = vmatpush3.bf16.msra.mxu1 %v1741_v13 }
  0xd9   : > { %1660 = vmatmul.mubr.msk.f32.vlgmr.msra.gmra.mrb[0].mxu0 %vm436_vm1, %v431_v14  ;;  %1680 = vmatprep.subr.mxu1 %v2180_v1 }
  0xda   : > { %1677 = vmatprep.mubr.msk.f32.mxu0 %vm2179_vm0, %v2180_v1  ;;  %1745 = vmatpush3.bf16.msra.mxu0 %v1744_v17 }
  0xdb   : > { %1685 = vmatprep.subr.mxu0 %v2180_v1 }
 0x1ac   : > { %v2546_v18 = vpop.f32.mrb[0].mxu0 }
 0x1ad   : > { %600 = vrot.lane.b32.xlu0 %v2546_v18, %s2181_s16  ;;  %v1661_v19 = vpop.f32.mrb[1].mxu0  ;;  %1671 = vmatmul.mubr.msk.f32.vlgmr.msra.gmra.mrb[0].mxu1 %vm436_vm1, %v2546_v18  ;;  %v511_v25 = vmul.f32 %v510_v22, %v2546_v18 }
 0x1ae   : > { %1682 = vmatprep.mubr.msk.f32.mxu1 %vm2179_vm0, %v2180_v1 }
 0x1b1   : > { %594 = vrot.lane.b32.xlu0 %v592_v20, %s2182_s17 }
 0x21f   : > { %v601_v21 = vpop.permute.xlu0 %600 }
 0x220   : > { %1678 = vmatmul.mubr.msk.f32.vlgmr.msra.gmra.mrb[2].mxu0 %vm602_vm2, %v601_v21 }
 0x221   : > { %1687 = vmatprep.mubr.msk.f32.mxu0 %vm2179_vm0, %v2180_v1 }
 0x223   : > { %v595_v33 = vpop.permute.xlu0 %594 }
 0x224   : > { %v597_v34 = vmul.f32 %v595_v33, %v2546_v18 }
 0x280   : > { %v585_v24 = vpop.f32.mrb[0].mxu1 }
 0x281   : > { %v590_v26 = vmul.f32 %v589_v23, %v585_v24  ;;  %v1672_v27 = vpop.f32.mrb[1].mxu1 }
 0x283   : > { %v591_v28 = vadd.f32 %v590_v26, %v511_v25 }
 0x285   : > { %855 = vrot.lane.b32.xlu0 %v591_v28, %s2183_s19  ;;  %s430_s19 = scalar_lea.vmem [#allocation14], %s1589_s13  ;;  %s2093_s13 = sshll.u32 %s2192_s15, 4  ;;  %s2094_s13 = int_to_ptr.vmem [resolvable:$false] %s2093_s13 }
 0x289   : > { %1015 = vrot.lane.b32.xlu0 %v591_v28, %s2184_s21  ;;  %s1450_s21 = sshll.u32 %s430_s19, 4  ;;  %s2625_s21 = int_to_ptr.vmem [resolvable:$true] %s1450_s21 }
 0x28a   : > { %p2096_p13 = scmp.lt.s32.totalorder %s2625_s21, %s2094_s13 }
 0x2f3   : > { %v671_v30 = vpop.f32.mrb[2].mxu0 }
 0x2f4   : > { %v676_v31 = vmul.f32 %v675_v29, %v671_v30  ;;  %v1679_v32 = vpop.f32.mrb[3].mxu0 }
 0x2f6   : > { %678 = vrot.lane.b32.xlu1 %v676_v31, %s2182_s17  ;;  %s2190_s17 = smov 16  }
 0x2f7   : > { %v856_v38 = vpop.permute.xlu0 %855 }
 0x2fb   : > { %v1016_v40 = vpop.permute.xlu0 %1015 }
 0x368   : > { %v679_v35 = vpop.permute.xlu1 %678 }
 0x369   : > { %v681_v36 = vadd.f32 %v679_v35, %v597_v34 }
 0x36b   : > { %688 = vrot.lane.b32.xlu1 %v681_v36, %s2181_s16  ;;  %s2189_s16 = smov 8  }
 0x36f   : > { %1017 = vrot.lane.b32.xlu1 %v681_v36, %s2185_s28  ;;  %s2701_s28 = sld [smem:[#allocation21_spill]] }
 0x373   : > { %1182 = vrot.lane.b32.xlu1 %v591_v28, %s2186_s29 }
 0x375   : > { %s2623_s29 = scalar_lea.hbm %s2701_s28, %s1614_s23 }
 0x3dd   : > { %v689_v37 = vpop.permute.xlu1 %688 }
 0x3de   : > { %1681 = vmatpush3.xpose.msk.msra.mxu1 %vm690_vm3, %v689_v37 }
 0x3df   : > { %1690 = vmatprep.subr.mxu1 %v2180_v1 }
 0x3e1   : > { %1683 = vmatmul.mubr.msk.f32.vlgmr.msra.gmra.mrb[2].mxu1 %vm690_vm3, %v591_v28  ;;  %v1018_v39 = vpop.permute.xlu1 %1017 }
 0x3e2   : > { %1691 = vmatpush3.xpose.msk.msra.mxu1 %vm690_vm3, %v689_v37  ;;  %1692 = vmatprep.mubr.msk.f32.mxu1 %vm2179_vm0, %v2180_v1  ;;  %v1358_v37 = vld [vmem:[#allocation7] sm:$0xff] }
 0x3e3   : > { %1700 = vmatprep.subr.mxu1 %v2180_v1 }
 0x3e5   : > { %1693 = vmatmul.mubr.msk.f32.vlgmr.msra.gmra.mrb[4].mxu1 %vm690_vm3, %v856_v38  ;;  %v1183_v41 = vpop.permute.xlu1 %1182  ;;  %v1359_v38 = vld [vmem:[#allocation7 + $0x8] sm:$0xff] }
 0x3e6   : > { %1701 = vmatpush3.xpose.msk.msra.mxu1 %vm690_vm3, %v1018_v39  ;;  %1702 = vmatprep.mubr.msk.f32.mxu1 %vm2179_vm0, %v2180_v1 }
 0x3e7   : > { %1710 = vmatprep.subr.mxu1 %v2180_v1 }
 0x3e9   : > { %1703 = vmatmul.mubr.msk.f32.vlgmr.msra.gmra.mrb[6].mxu1 %vm690_vm3, %v1016_v40  ;;  %v1360_v40 = vld [vmem:[#allocation7 + $0x10] sm:$0xff] }
 0x3ea   : > { %1711 = vmatpush3.xpose.msk.msra.mxu1 %vm690_vm3, %v1018_v39  ;;  %1712 = vmatprep.mubr.msk.f32.mxu1 %vm2179_vm0, %v2180_v1  ;;  %v1747_v39 = vpack.c.bf16 %v1359_v38, %v1358_v37 }
 0x3eb   : > { %1746 = vmatprep.subr.bf16.mxu1 %v2178_v0 }
 0x3ed   : > { %1713 = vmatmul.mubr.msk.f32.vlgmr.msra.gmra.mrb[8].mxu1 %vm690_vm3, %v1183_v41  ;;  %v1361_v41 = vld [vmem:[#allocation7 + $0x18] sm:$0xff] }
 0x3ee   : > { %1728 = vmatprep.mubr.msk.f32.mxu1 %vm2179_vm0, %v2180_v1  ;;  %1748 = vmatpush3.bf16.msra.mxu1 %v1747_v39  ;;  %v1750_v42 = vpack.c.bf16 %v1361_v41, %v1360_v40 }
 0x3ef   : > { %1749 = vmatprep.subr.bf16.mxu1 %v2178_v0 }
 0x3f2   : > { %1751 = vmatpush3.bf16.msra.mxu1 %v1750_v42 }
 0x4b4   : > { %v762_v45 = vpop.f32.mrb[2].mxu1 }
 0x4b5   : > { %v766_v46 = vmul.f32 0.35355338, %v762_v45  ;;  %v1684_v47 = vpop.f32.mrb[3].mxu1 }
 0x4b7   : > { %v767_v48 = vsel %vm686_vm4, %v766_v46, -inf }
 0x4b8   : > { %v925_v49 = vpop.f32.mrb[4].mxu1  ;;  %v768_v50 = vsel %vm690_vm3, %v767_v48, -inf }
 0x4b9   : > { %v929_v51 = vmul.f32 0.35355338, %v925_v49  ;;  %769 = vmax.xlane.f32.xlu0 %v768_v50  ;;  %v1694_v52 = vpop.f32.mrb[5].mxu1 }
 0x4bb   : > { %v930_v53 = vsel %vm686_vm4, %v929_v51, -inf }
 0x4bc   : > { %v1089_v54 = vpop.f32.mrb[6].mxu1  ;;  %v931_v55 = vsel %vm690_vm3, %v930_v53, -inf }
 0x4bd   : > { %v1093_v56 = vmul.f32 0.35355338, %v1089_v54  ;;  %932 = vmax.xlane.f32.xlu1 %v931_v55  ;;  %v1704_v57 = vpop.f32.mrb[7].mxu1 }
 0x4bf   : > { %v1094_v58 = vsel %vm686_vm4, %v1093_v56, -inf }
 0x4c0   : > { %v1252_v59 = vpop.f32.mrb[8].mxu1  ;;  %v1095_v60 = vsel %vm690_vm3, %v1094_v58, -inf }
 0x4c1   : > { %v1256_v61 = vmul.f32 0.35355338, %v1252_v59  ;;  %1096 = vmax.xlane.f32.xlu0 %v1095_v60  ;;  %v1714_v62 = vpop.f32.mrb[9].mxu1 }
 0x4c3   : > { %v1257_v63 = vsel %vm686_vm4, %v1256_v61, -inf }
 0x4c4   : > { %v1258_v2 = vsel %vm690_vm3, %v1257_v63, -inf }
 0x4c5   : > { %1259 = vmax.xlane.f32.xlu0 %v1258_v2 }
 0x546   : > { %v770_v3 = vpop.xlane.xlu0 %769 }
 0x547   : > { %v771_v4 = vsub.f32 %v767_v48, %v770_v3 }
 0x549   : > { %v772_v5 = vmul.f32 1.442695, %v771_v4 }
 0x54a   : > { %v933_v6 = vpop.xlane.xlu1 %932 }
 0x54b   : > { %1875 = vpow2.f32 %v772_v5  ;;  %v934_v7 = vsub.f32 %v930_v53, %v933_v6 }
 0x54d   : > { %v935_v8 = vmul.f32 1.442695, %v934_v7 }
 0x54e   : > { %v1097_v9 = vpop.xlane.xlu0 %1096 }
 0x54f   : > { %1877 = vpow2.f32 %v935_v8  ;;  %v1098_v10 = vsub.f32 %v1094_v58, %v1097_v9 }
 0x551   : > { %v1099_v11 = vmul.f32 1.442695, %v1098_v10 }
 0x552   : > { %v1260_v12 = vpop.xlane.xlu0 %1259 }
 0x553   : > { %1879 = vpow2.f32 %v1099_v11  ;;  %v1261_v13 = vsub.f32 %v1257_v63, %v1260_v12 }
 0x555   : > { %v1876_v14 = vpop.eup %1875  ;;  %v1262_v15 = vmul.f32 1.442695, %v1261_v13 }
 0x556   : > { %v774_v16 = vsel %vm690_vm3, %v1876_v14, 0.0 }
 0x557   : > { %1881 = vpow2.f32 %v1262_v15  ;;  %775 = vadd.xlane.f32.xlu1 %v774_v16 }
 0x559   : > { %v1878_v17 = vpop.eup %1877 }
 0x55a   : > { %v937_v19 = vsel %vm690_vm3, %v1878_v17, 0.0 }
 0x55b   : > { %938 = vadd.xlane.f32.xlu0 %v937_v19 }
 0x55d   : > { %v1880_v20 = vpop.eup %1879 }
 0x55e   : > { %v1101_v21 = vsel %vm690_vm3, %v1880_v20, 0.0 }
 0x55f   : > { %1102 = vadd.xlane.f32.xlu1 %v1101_v21 }
 0x561   : > { %v1882_v22 = vpop.eup %1881 }
 0x562   : > { %v1264_v23 = vsel %vm690_vm3, %v1882_v22, 0.0 }
 0x563   : > { %1265 = vadd.xlane.f32.xlu0 %v1264_v23 }
 0x570   : > { %779 = vrot.lane.b32.xlu1 %v2546_v18, %s2187_s24  ;;  %s1437_s24 = scalar_lea.sflag [#allocation4], %s2507_s1 }
 0x579   : > { %1106 = vrot.lane.b32.xlu0 %v2546_v18, %s2188_s18  ;;  %s2089_s18 = scalar_lea.vmem %s2625_s21, 128 }
 0x57a   : > { %p2090_p6 = scmp.ne.s32.totalorder %s2625_s21, %s2089_s18 }
 0x57c   : > { %p2091_p12 = pnand %p2090_p6, %p2702_p9 }
 0x57e   : > { %p2092_p1 = pneg %p2091_p12 }
 0x5e4   : > { %v776_v24 = vpop.xlane.xlu1 %775 }
 0x5e5   : > { %1883 = vrcp.f32 %v776_v24 }
 0x5e8   : > { %v939_v25 = vpop.xlane.xlu0 %938 }
 0x5e9   : > { %1885 = vrcp.f32 %v939_v25 }
 0x5ec   : > { %v1103_v26 = vpop.xlane.xlu1 %1102 }
 0x5ed   : > { %1887 = vrcp.f32 %v1103_v26 }
 0x5ef   : > { %v1884_v27 = vpop.eup %1883 }
 0x5f0   : > { %v778_v28 = vmul.f32 %v1884_v27, %v1876_v14  ;;  %v1266_v29 = vpop.xlane.xlu0 %1265  ;;  %v780_v30 = vpop.permute.xlu1 %779 }
 0x5f1   : > { %1889 = vrcp.f32 %v1266_v29  ;;  %1686 = vmatpush3.msra.mxu0 %v780_v30 }
 0x5f2   : > { %1688 = vmatmul.mubr.msk.f32.vlgmr.msra.gmra.mrb[4].mxu0 %vm690_vm3, %v778_v28  ;;  %1695 = vmatprep.subr.mxu0 %v2180_v1 }
 0x5f3   : > { %v1886_v31 = vpop.eup %1885  ;;  %1696 = vmatpush3.msra.mxu0 %v780_v30  ;;  %1697 = vmatprep.mubr.msk.f32.mxu0 %vm2179_vm0, %v2180_v1 }
 0x5f4   : > { %v941_v18 = vmul.f32 %v1886_v31, %v1878_v17  ;;  %v1107_v32 = vpop.permute.xlu0 %1106  ;;  %1705 = vmatprep.subr.mxu0 %v2180_v1 }
 0x5f6   : > { %1698 = vmatmul.mubr.msk.f32.vlgmr.msra.gmra.mrb[6].mxu0 %vm690_vm3, %v941_v18 }
 0x5f7   : > { %v1888_v33 = vpop.eup %1887  ;;  %1706 = vmatpush3.msra.mxu0 %v1107_v32  ;;  %1707 = vmatprep.mubr.msk.f32.mxu0 %vm2179_vm0, %v2180_v1 }
 0x5f8   : > { %v1105_v34 = vmul.f32 %v1888_v33, %v1880_v20  ;;  %1715 = vmatprep.subr.mxu0 %v2180_v1 }
 0x5fa   : > { %1708 = vmatmul.mubr.msk.f32.vlgmr.msra.gmra.mrb[8].mxu0 %vm690_vm3, %v1105_v34 }
 0x5fb   : > { %v1890_v35 = vpop.eup %1889  ;;  %1716 = vmatpush3.msra.mxu0 %v1107_v32  ;;  %1717 = vmatprep.mubr.msk.f32.mxu0 %vm2179_vm0, %v2180_v1 }
 0x5fc   : > { %v1268_v36 = vmul.f32 %v1890_v35, %v1882_v22 }
 0x5fe   : > { %1718 = vmatmul.mubr.msk.f32.vlgmr.msra.gmra.mrb[10].mxu0 %vm690_vm3, %v1268_v36 }
 0x6c5   : > { %v851_v43 = vpop.f32.mrb[4].mxu0 }
 0x6c6   : > { %v1689_v44 = vpop.f32.mrb[5].mxu0 }
 0x6c9   : > { %v1011_v45 = vpop.f32.mrb[6].mxu0 }
 0x6ca   : > { %1343 = vrot.lane.b32.xlu1 %v1011_v45, %s2189_s16  ;;  %v1699_v46 = vpop.f32.mrb[7].mxu0  ;;  %s2095_s16 = scalar_lea.vmem %s2094_s13, 256 }
 0x6cb   : > { %p2097_p0 = scmp.lt.s32.totalorder %s2095_s16, %s2089_s18 }
 0x6cd   : > { %v1178_v1 = vpop.f32.mrb[8].mxu0  ;;  %p2098_p2 = por %p2097_p0, %p2096_p13 }
 0x6ce   : > { %1347 = vrot.lane.b32.xlu1 %v1178_v1, %s2190_s17  ;;  %v1709_v47 = vpop.f32.mrb[9].mxu0 }
 0x6cf   : > { %p2099_p3 = pnand %p2098_p2, %p2092_p1 }
 0x6d1   : > { %v1338_v48 = vpop.f32.mrb[10].mxu0 }
 0x6d2   : > { %1351 = vrot.lane.b32.xlu0 %v1338_v48, %s2191_s25  ;;  %v1719_v0 = vpop.f32.mrb[11].mxu0 }
 0x73c   : > { %v1344_v49 = vpop.permute.xlu1 %1343 }
 0x73d   : > { %v1354_v51 = vsel %vm690_vm3, %v851_v43, %v1344_v49 }
 0x740   : > { %v1348_v50 = vpop.permute.xlu1 %1347 }
 0x741   : > { %v1355_v52 = vsel %vm602_vm2, %v1354_v51, %v1348_v50 }
 0x744   : > { %v1352_v53 = vpop.permute.xlu0 %1351 }
 0x745   : > { %v1357_v54 = vsel %vm1356_vm5, %v1355_v52, %v1352_v53 }
 0x746   : > { %1729 = vmatmul.mubr.msk.f32.vlgmr.msra.gmra.mrb[10].mxu1 %vm436_vm1, %v1357_v54 }
 0x819   : > { %v1431_v55 = vpop.f32.mrb[10].mxu1 }
 0x81a   : > { %1435 = vst.msk [vmem:[%s430_s19] sm:$0xff] %vm436_vm1, %v1431_v55  ;;  %v1730_v56 = vpop.f32.mrb[11].mxu1 }
 0x81b   : > { %2102 = shalt.err (!%p2099_p3)
}
 0x81c   : > { %s2103_s1 = scalar_lea.hbm %s2623_s29, 128  ;;  %s2107_s23 = scalar_lea.hbm %s2701_s28, 256 }
 0x81d   : > { %p2104_p4 = scmp.ne.s32.totalorder %s2623_s29, %s2103_s1  ;;  %p2108_p8 = scmp.lt.u32.totalorder %s2623_s29, %s2701_s28 }
 0x81e   : > { %p2109_p5 = scmp.lt.u32.totalorder %s2107_s23, %s2103_s1  ;;  %p2111_p6 = scmp.lt.u32.totalorder %s2103_s1, %s2623_s29 }
 0x81f   : > { %p2105_p10 = pnand %p2104_p4, %p2702_p9 }
 0x820   : > { %p2110_p7 = por %p2109_p5, %p2108_p8 }
 0x821   : > { %p2106_p11 = pneg %p2105_p10 }
 0x822   : > { %p2112_p12 = por %p2111_p6, %p2110_p7 }
 0x824   : > { %p2113_p1 = pnand %p2112_p12, %p2106_p11 }
 0x826   : > { %2116 = shalt.err (!%p2113_p1)
}
 0x827   : > { %1778 = dma.vmem_to_hbm [thread:$0]  (%p2702_p9), %s2625_s21, 128, %s2623_s29, %s1437_s24  }
 0x828 PF: > { %s1462_s14 = sand.u32 1, %s2155_s30   ;;  %p2703_p13 = scmp.ne.s32.totalorder %s2692_s26, 0 }
 0x829   : > { %p2704_p0 = scmp.ge.s32.totalorder %s2167_s12, 2  ;;  %s1463_s18 = scalar_lea.sflag [#allocation4], %s1462_s14 }
 0x82b   : > { %p1804_p2 = pnand %p2704_p0, %p2703_p13 }
 0x82d   : > { %2150 = dma.done.wait (!%p1804_p2), %s1463_s18, 128  }
 0x82e   : > { %2152 = vsyncadd (!%p1804_p2), %s1463_s18, 4294967168  ;;  %p25_p3 = scmp.ge.s32.totalorder %s2431_s27, 4   ;;  %s2705_s30 = smov %s2159_s10 }
 0x82f   : > { %s2706_s10 = smov %s2163_s11  ;;  %s2707_s11 = smov %s2442_s22 }
 0x830   : > { %s2708_s12 = smov %s2431_s27  ;;  %27 = sbr.rel (!%p25_p3) target bundleno = 11 (0xb), region = 125 }
 0x837   :  { %1468 = vsyncpa [#allocation3], 1 }
 0x838   :  { %1470 = vsyncpa [#allocation3 + $0x1], 1 }
 0x839   :  { %1471 = vsyncpa [#allocation6], 1 }
 0x83a   :  { %1472 = vsyncpa [#allocation9], 1 }
 0x83b   :  { %1473 = vsyncpa [#allocation12], 1 }
 0x83c   :  { %1474 = vsyncpa [#allocation4], 1 }
 0x83d   :  { %1476 = vsyncpa [#allocation4 + $0x1], 1 }

</bundles_post_ra>
